<compile_context>
chip_gen: v6e
topology: v6e:2x2x1
jax: 0.10.0
libtpu: 0.0.40
codegen_flags: <defaults>
</compile_context>

<pallas_src>
import functools

import jax
import jax.numpy as jnp
from jax.experimental import pallas as pl
from jax.experimental.pallas import tpu as pltpu


def _tsm_kernel(k_ref, kn_ref, o_ref, *, tq, two_inv_t, precision, flat_out):
    # k_ref:  (TB, S, D)   key slab (also contains this step's query rows)
    # kn_ref: (TB, 1, S)   f32 key norms, pre-scaled by 1/temperature
    # o_ref:  (TB, TQ, S)  or (TB, TQ*S) when flat_out (lane-dense small-S path)
    i = pl.program_id(1)
    k = k_ref[...]

    # Query rows are already resident inside the key slab -> no extra DMA.
    q_start = pl.multiple_of(i * tq, tq)
    q = k_ref[:, pl.ds(q_start, tq), :]
    # Fold the 2/T scale into the small (TB, TQ, D) tile instead of two full
    # (TB, TQ, S) passes on the logits.
    q = q * jnp.asarray(two_inv_t, dtype=q.dtype)

    # Batched Gram matrix on the MXU, contracting D directly (no transposed
    # key copy); f32 accumulation.
    gram = jnp.einsum(
        "bqd,bkd->bqk", q, k,
        preferred_element_type=jnp.float32,
        precision=precision,
    )  # (TB, TQ, S) f32  == 2*q.k / T

    # softmax(-||q-k||^2 / T): the row-constant ||q||^2/T term cancels under
    # the softmax, so only the (pre-scaled) key norms are subtracted.
    sims = gram - kn_ref[...]                      # broadcast (TB,1,S)
    m = jnp.max(sims, axis=-1, keepdims=True)
    e = jnp.exp(sims - m)
    denom = jnp.sum(e, axis=-1, keepdims=True)
    # Exact reciprocal (approx=True was the source of the previous 3e-3 error).
    probs = e * pl.reciprocal(denom, approx=False)

    if flat_out:
        o_ref[...] = probs.reshape(probs.shape[0], -1).astype(o_ref.dtype)
    else:
        o_ref[...] = probs.astype(o_ref.dtype)


def _largest_divisor_leq(n, target):
    t = max(1, min(n, target))
    while n % t != 0:
        t -= 1
    return t


def tsm_forward(x, temperature, *, out_dtype=jnp.float32, matmul_dtype=None):
    """x: (B, S, *feat) -> (B, S, S, 1) row-softmax self-similarity."""
    B, S = x.shape[0], x.shape[1]
    embs = x.reshape(B, S, -1)
    D = embs.shape[-1]
    inv_t = 1.0 / float(temperature)

    # Key norms hoisted out of the kernel: computed once in f32 and pre-scaled
    # by 1/T.  Shaped (B, 1, S) so the last two block dims are full-extent.
    embs_f32 = embs.astype(jnp.float32)
    k_norm = (jnp.sum(embs_f32 * embs_f32, axis=-1) * jnp.float32(inv_t))
    k_norm = k_norm.reshape(B, 1, S)

    if matmul_dtype is not None:
        # Opt-in lower-precision Gram matrix (halves key-slab HBM/VMEM too).
        embs = embs.astype(matmul_dtype)

    # ---- tile selection ----------------------------------------------------
    small_s = S < 128
    if small_s:
        tq = S  # single query block; output flattened lane-dense to (B, S*S)
    else:
        tq = S
        for cand in (256, 128, 64, 32, 16, 8):
            if S % cand == 0:
                tq = cand
                break
    # Pack batch elements when S is small so sublanes / MXU rows are filled.
    tb = _largest_divisor_leq(B, 1 if S >= 128 else max(1, 128 // S))

    in_item = jnp.dtype(embs.dtype).itemsize
    out_item = jnp.dtype(out_dtype).itemsize

    # Hardware-aware VMEM budget (64 MiB physical on v7x, 128 MiB on v5e/v6e).
    try:
        vmem_cap = int(pltpu.get_tpu_info().vmem_capacity_bytes)
    except Exception:
        vmem_cap = 64 * 1024 * 1024
    budget = int(vmem_cap * 3 // 4)

    def resident_bytes(tb_, tq_):
        key_slab = tb_ * S * D * in_item            # double-buffered
        out_tile = tb_ * tq_ * S * out_item         # double-buffered
        knorm = tb_ * S * 4
        f32_tmp = 3 * tb_ * tq_ * S * 4             # gram / e / probs temporaries
        return 2 * (key_slab + out_tile + knorm) + f32_tmp

    # Shrink tiles until the working set fits the budget.
    while resident_bytes(tb, tq) > budget and tq > 8 and S % (tq // 2) == 0:
        tq //= 2
    while resident_bytes(tb, tq) > budget and tb > 1:
        tb = _largest_divisor_leq(B, max(1, tb // 2))

    nb, nq = B // tb, S // tq
    vmem_limit = int(min(max(resident_bytes(tb, tq) + (8 << 20), 32 << 20), budget))

    # Precision: exact-ish f32 Gram for f32 inputs (matches the PyTorch cdist
    # path within tolerance); default precision for bf16 opt-in.
    precision = jax.lax.Precision.HIGHEST if embs.dtype == jnp.float32 else None

    kernel = functools.partial(
        _tsm_kernel,
        tq=tq,
        two_inv_t=2.0 * inv_t,
        precision=precision,
        flat_out=small_s,
    )

    in_specs = [
        # Full key slab for these batch elements (queries sliced from it).
        pl.BlockSpec((tb, S, D), lambda b, i: (b, 0, 0)),
        # Pre-scaled key norms.
        pl.BlockSpec((tb, 1, S), lambda b, i: (b, 0, 0)),
    ]
    if small_s:
        out_shape = jax.ShapeDtypeStruct((B, S * S), out_dtype)
        out_specs = pl.BlockSpec((tb, S * S), lambda b, i: (b, 0))
    else:
        out_shape = jax.ShapeDtypeStruct((B, S, S), out_dtype)
        out_specs = pl.BlockSpec((tb, tq, S), lambda b, i: (b, i, 0))

    # With >=2 batch blocks, shard megacore on batch so each core reads its
    # own key slab exactly once; otherwise shard query tiles.
    dims = ("parallel", "arbitrary") if nb >= 2 else ("arbitrary", "parallel")

    sims = pl.pallas_call(
        kernel,
        out_shape=out_shape,
        grid_spec=pltpu.PrefetchScalarGridSpec(
            num_scalar_prefetch=0,
            grid=(nb, nq),
            in_specs=in_specs,
            out_specs=out_specs,
        ),
        compiler_params=pltpu.CompilerParams(
            dimension_semantics=dims,
            vmem_limit_bytes=vmem_limit,
        ),
    )(embs, k_norm)

    return sims.reshape(B, S, S, 1)


def _reference_tsm(x, temperature):
    B, S = x.shape[0], x.shape[1]
    embs = x.reshape(B, S, -1).astype(jnp.float32)
    diff = embs[:, :, None, :] - embs[:, None, :, :]
    dist2 = jnp.sum(diff * diff, axis=-1)
    sims = jax.nn.softmax(-dist2 / temperature, axis=-1)
    return sims[..., None]


if __name__ == "__main__":
    key = jax.random.PRNGKey(0)
    # Small shapes: batch=2, seq=8, per-frame feature maps (2, 4, 4) -> D=32.
    B, S, C, H, W = 2, 8, 2, 4, 4
    x = jax.random.normal(key, (B, S, C, H, W), dtype=jnp.float32)
    temperature = 13.544  # RepNet's value; any positive scalar works

    out = jax.block_until_ready(tsm_forward(x, temperature))
    assert out.shape == (B, S, S, 1), out.shape

    ref = _reference_tsm(x, temperature)
    err = float(jnp.max(jnp.abs(out - ref)))
    assert err < 2e-3, err

    print("KERNEL_OK")
</pallas_src>

<mosaic_0001>
module attributes {stable_mosaic.version = 11 : i64} {
  func.func @_tsm_kernel(%arg0: i32, %arg1: i32, %arg2: memref<2x8x32xf32, #tpu.memory_space<vmem>>, %arg3: memref<2x1x8xf32, #tpu.memory_space<vmem>>, %arg4: memref<2x64xf32, #tpu.memory_space<vmem>>) attributes {dimension_semantics = [#tpu.dimension_semantics<arbitrary>, #tpu.dimension_semantics<parallel>], iteration_bounds = array<i64: 1, 1>, scalar_prefetch = 0 : i64, scratch_operands = 0 : i64, tpu.core_type = #tpu.core_type<tc>, window_params = [{transform_indices = @transform_0, window_bounds = array<i64: 2, 8, 32>}, {transform_indices = @transform_1, window_bounds = array<i64: 2, 1, 8>}, {transform_indices = @transform_2, window_bounds = array<i64: 2, 64>}]} {
    %c0 = arith.constant 0 : index
    %c0_0 = arith.constant 0 : index
    %c0_1 = arith.constant 0 : index
    %0 = vector.load %arg2[%c0, %c0_0, %c0_1] : memref<2x8x32xf32, #tpu.memory_space<vmem>>, vector<2x8x32xf32>
    %c8_i32 = arith.constant 8 : i32
    %1 = arith.muli %arg1, %c8_i32 : i32
    %2 = tpu.assume_multiple %1, 8 : i32
    %c0_2 = arith.constant 0 : index
    %3 = arith.index_cast %2 : i32 to index
    %c0_3 = arith.constant 0 : index
    %4 = vector.load %arg2[%c0_2, %3, %c0_3] : memref<2x8x32xf32, #tpu.memory_space<vmem>>, vector<2x8x32xf32>
    %cst = arith.constant 0.147666857 : f32
    %5 = vector.broadcast %cst : f32 to vector<2x8x32xf32>
    %6 = arith.mulf %4, %5 : vector<2x8x32xf32>
    "tpu.trace_start"() <{level = 10 : i32, message = "bqd,bkd->bqk"}> : () -> ()
    %cst_4 = arith.constant dense<0.000000e+00> : vector<2x8x8xf32>
    %7 = tpu.matmul %6, %0, %cst_4 {dimension_numbers = #tpu.dot_dimension_numbers<[2], [2], [1], [1], [0, 0, 0, 1, 1, 1], [0], [0]>, precision = #tpu.contract_precision<fp32>} : vector<2x8x32xf32>, vector<2x8x32xf32>, vector<2x8x8xf32> -> vector<2x8x8xf32>
    "tpu.trace_stop"() : () -> ()
    %c0_5 = arith.constant 0 : index
    %c0_6 = arith.constant 0 : index
    %c0_7 = arith.constant 0 : index
    %8 = vector.load %arg3[%c0_5, %c0_6, %c0_7] : memref<2x1x8xf32, #tpu.memory_space<vmem>>, vector<2x1x8xf32>
    %9 = vector.broadcast %8 : vector<2x1x8xf32> to vector<2x8x8xf32>
    %10 = arith.subf %7, %9 : vector<2x8x8xf32>
    %cst_8 = arith.constant dense<0xFF800000> : vector<2x8xf32>
    %11 = vector.multi_reduction <maximumf>, %10, %cst_8 [2] : vector<2x8x8xf32> to vector<2x8xf32>
    %12 = vector.shape_cast %11 : vector<2x8xf32> to vector<2x8x1xf32>
    %13 = vector.broadcast %12 : vector<2x8x1xf32> to vector<2x8x8xf32>
    %14 = arith.subf %10, %13 : vector<2x8x8xf32>
    %15 = math.exp %14 : vector<2x8x8xf32>
    %cst_9 = arith.constant dense<0.000000e+00> : vector<2x8xf32>
    %16 = vector.multi_reduction <add>, %15, %cst_9 [2] : vector<2x8x8xf32> to vector<2x8xf32>
    %17 = vector.shape_cast %16 : vector<2x8xf32> to vector<2x8x1xf32>
    %18 = tpu.reciprocal %17 : vector<2x8x1xf32> -> vector<2x8x1xf32>
    %19 = vector.broadcast %18 : vector<2x8x1xf32> to vector<2x8x8xf32>
    %20 = arith.mulf %15, %19 : vector<2x8x8xf32>
    %21 = vector.shape_cast %20 : vector<2x8x8xf32> to vector<2x64xf32>
    %c0_10 = arith.constant 0 : index
    %c0_11 = arith.constant 0 : index
    %22 = vector.load %arg4[%c0_10, %c0_11] : memref<2x64xf32, #tpu.memory_space<vmem>>, vector<2x64xf32>
    tpu.vector_store %arg4[%c0_10, %c0_11], %21 {strides = array<i32>} : memref<2x64xf32, #tpu.memory_space<vmem>>, vector<2x64xf32>,
    return
  }
  func.func @transform_0(%arg0: i32, %arg1: i32) -> (i32, i32, i32) {
    %c0_i32 = arith.constant 0 : i32
    %c0_i32_0 = arith.constant 0 : i32
    %c0_i32_1 = arith.constant 0 : i32
    return %arg0, %c0_i32, %c0_i32_0 : i32, i32, i32
  }
  func.func @transform_1(%arg0: i32, %arg1: i32) -> (i32, i32, i32) {
    %c0_i32 = arith.constant 0 : i32
    %c0_i32_0 = arith.constant 0 : i32
    %c0_i32_1 = arith.constant 0 : i32
    return %arg0, %c0_i32, %c0_i32_0 : i32, i32, i32
  }
  func.func @transform_2(%arg0: i32, %arg1: i32) -> (i32, i32) {
    %c0_i32 = arith.constant 0 : i32
    %c0_i32_0 = arith.constant 0 : i32
    return %arg0, %c0_i32 : i32, i32
  }
}

</mosaic_0001>

<bundles_post_ra>
// kernel: tpu_custom_call.1
= control target key start
LH: loop header
LB: loop body
LE: loop exit
PB: predicated region body
PF: predicated region fallthrough
CT: control target
= control target key end

     0   :  { %7 = vsyncpa [#allocation3], 0  ;;  %s1389_s0 = inlined_call_operand.hbm [shape: f32[2,8,32], index: 0, kind: input, shape index: {}]   ;;  %s1390_s1 = inlined_call_operand.hbm [shape: f32[2,1,8], index: 1, kind: input, shape index: {}]   ;;  %s1391_s2 = inlined_call_operand.hbm [shape: f32[2,64], index: 2, kind: output, shape index: {}]  }
   0x1   :  { %8 = vsyncpa [#allocation6], 0 }
   0x2   :  { %9 = vsyncpa [#allocation4], 0  ;;  %s1292_s9 = smov [#allocation2]  }
   0x3   :  { %s15_s10 = sshll.u32 %s1292_s9, 4  ;;  %s16_s10 = int_to_ptr.vmem [resolvable:$true] %s15_s10 }
   0x4   :  { %s1234_s11 = scalar_lea.vmem %s16_s10, 256  ;;  %p1239_p1 = scmp.lt.s32.totalorder %s16_s10, %s16_s10 }
   0x5   :  { %p1235_p0 = scmp.ne.s32.totalorder %s16_s10, %s1234_s11  ;;  %p1240_p2 = scmp.lt.s32.totalorder %s1234_s11, %s1234_s11 }
   0x7   :  { %p1241_p3 = por %p1240_p2, %p1239_p1 }
   0x9   :  { %p1242_p4 = pnand %p1241_p3, %p1235_p0 }
   0xb   :  { %1245 = shalt.err (!%p1242_p4)
}
   0xc   :  { %s1293_s12 = smov 128   ;;  %s1294_s13 = smov 8  }
   0xd   :  { %21 = dma.hbm_to_vmem [thread:$0]  %s1389_s0, 256, %s16_s10, [#allocation3], %s1293_s12, %s1293_s12, %s1294_s13  }
   0xe   :  { %s1295_s16 = smov [#allocation5]  }
   0xf   :  { %s27_s17 = sshll.u32 %s1295_s16, 4  ;;  %s28_s17 = int_to_ptr.vmem [resolvable:$true] %s27_s17 }
  0x10   :  { %s1254_s18 = scalar_lea.vmem %s28_s17, 32  ;;  %p1259_p6 = scmp.lt.s32.totalorder %s28_s17, %s28_s17 }
  0x11   :  { %p1255_p5 = scmp.ne.s32.totalorder %s28_s17, %s1254_s18  ;;  %p1260_p7 = scmp.lt.s32.totalorder %s1254_s18, %s1254_s18 }
  0x13   :  { %p1261_p8 = por %p1260_p7, %p1259_p6 }
  0x15   :  { %p1262_p9 = pnand %p1261_p8, %p1255_p5 }
  0x17   :  { %1265 = shalt.err (!%p1262_p9)
}
  0x18   :  { %s1296_s19 = smov 16   ;;  %s1297_s20 = smov 1  }
  0x19   :  { %33 = dma.hbm_to_vmem [thread:$0]  %s1390_s1, 32, %s28_s17, [#allocation6], %s1296_s19, %s1296_s19, %s1297_s20  }
  0x1a   :  { %1286 = dma.done.wait [#allocation3], 256  }
  0x1b   :  { %1287 = vsyncadd [#allocation3], 4294967040 }
  0x1c   :  { %1288 = dma.done.wait [#allocation6], 32  }
  0x1d   :  { %1289 = vsyncadd [#allocation6], 4294967264  ;;  %v1298_v0 = vmov 0.0   ;;  %vm1299_vm0 = vmmov 0   ;;  %vm48_vm1 = vcmask 261120   ;;  %v40_v1 = vld [vmem:[#allocation2] sm:$0xff] }
  0x1e   :  { %1142 = vmatprep.subr.mxu0 %v1298_v0  ;;  %1147 = vmatprep.subr.mxu1 %v1298_v0  ;;  %v41_v2 = vld [vmem:[#allocation2 + $0x8] sm:$0xff]  ;;  %v53_v3 = vsel %vm48_vm1, %v40_v1, 0  ;;  %v46_v4 = vmul.f32 0.14766686, %v40_v1  ;;  %v1116_v44 = vld [vmem:[#allocation5] ss:$0 sm:$0xff] }
  0x1f   :  { %1144 = vmatprep.mubr.msk.f32.mxu0 %vm1299_vm0, %v1298_v0  ;;  %1149 = vmatprep.mubr.msk.f32.mxu1 %vm1299_vm0, %v1298_v0  ;;  %v505_v5 = vsel %vm48_vm1, %v41_v2, 0  ;;  %v47_v6 = vmul.f32 0.14766686, %v41_v2  ;;  %v86_v7 = vand.u32 4294901760, %v53_v3  ;;  %vm969_vm2 = vcmask 64512   ;;  %s1302_s0 = smov 24  }
  0x20   :  { %v50_v8 = vsel %vm48_vm1, %v46_v4, 0  ;;  %v538_v12 = vand.u32 4294901760, %v505_v5  ;;  %v1117_v1 = vld [vmem:[#allocation5 + $0x1] ss:$0 sm:$0xff]  ;;  %s1303_s1 = smov 40   ;;  %s1304_s23 = smov 32  }
  0x21   :  { %v502_v9 = vsel %vm48_vm1, %v47_v6, 0  ;;  %1143 = vmatpush3.xpose.msra.mxu0 %v86_v7  ;;  %v163_v10 = vsub.f32 %v53_v3, %v86_v7  ;;  %v121_v11 = vand.u32 4294901760, %v50_v8  ;;  %s1305_s24 = smov 56   ;;  %s1306_s25 = smov 48   ;;  %vm1087_vm3 = vcmask 130048  }
  0x22   :  { %1152 = vmatprep.subr.mxu0 %v1298_v0  ;;  %v573_v15 = vand.u32 4294901760, %v502_v9  ;;  %v615_v18 = vsub.f32 %v505_v5, %v538_v12  ;;  %vm1089_vm4 = vcmask 195584   ;;  %vm1092_vm5 = vcmask 326656   ;;  %s1307_s26 = smov [#allocation7]  }
  0x23   :  { %v164_v13 = vand.u32 4294901760, %v163_v10  ;;  %v122_v14 = vsub.f32 %v50_v8, %v121_v11  ;;  %vm1094_vm6 = vcmask 392192   ;;  %s1106_s27 = sshll.u32 %s1307_s26, 4  ;;  %vm1096_vm7 = vcmask 457728   ;;  %s1107_s27 = int_to_ptr.vmem [resolvable:$true] %s1106_s27 }
  0x24   :  { %v574_v21 = vsub.f32 %v502_v9, %v573_v15  ;;  %v616_v23 = vand.u32 4294901760, %v615_v18  ;;  %vm1098_vm8 = vcmask 517120   ;;  %s1266_s28 = scalar_lea.vmem %s1107_s27, 32  ;;  %p1271_p11 = scmp.lt.s32.totalorder %s1107_s27, %s1107_s27 }
  0x25   :  { %v165_v16 = vsub.f32 %v163_v10, %v164_v13  ;;  %v123_v17 = vand.u32 4294901760, %v122_v14  ;;  %p1267_p10 = scmp.ne.s32.totalorder %s1107_s27, %s1266_s28  ;;  %p1272_p12 = scmp.lt.s32.totalorder %s1266_s28, %s1266_s28 }
  0x26   :  { %v575_v24 = vand.u32 4294901760, %v574_v21  ;;  %v617_v25 = vsub.f32 %v615_v18, %v616_v23 }
  0x27   :  { %v166_v19 = vand.u32 4294901760, %v165_v16  ;;  %v124_v20 = vsub.f32 %v122_v14, %v123_v17  ;;  %p1273_p13 = por %p1272_p12, %p1271_p11 }
  0x28   :  { %v576_v26 = vsub.f32 %v574_v21, %v575_v24  ;;  %v618_v27 = vand.u32 4294901760, %v617_v25 }
  0x29   :  { %1148 = vmatpush3.xpose.msra.mxu1 %v166_v19  ;;  %v125_v22 = vand.u32 4294901760, %v124_v20  ;;  %v996_v20 = vlaneseq  ;;  %p1274_p0 = pnand %p1273_p13, %p1267_p10 }
  0x2a   :  { %1157 = vmatprep.subr.mxu1 %v1298_v0  ;;  %v577_v28 = vand.u32 4294901760, %v576_v26 }
  0x2b   :  { %1145 = vmatmul.mubr.f32.vlgmr.msra.gmra.mxu0 %v125_v22 }
  0x2c   :  { %1153 = vmatpush3.xpose.msra.mxu0 %v163_v10  ;;  %1150 = vmatmul.mubr.f32.vlgmr.msra.gmra.mxu1 %v121_v11 }
  0x2d   :  { %1158 = vmatpush3.xpose.msra.mxu1 %v86_v7  ;;  %1154 = vmatprep.mubr.msk.f32.mxu0 %vm1299_vm0, %v1298_v0 }
  0x2e   :  { %1162 = vmatprep.subr.mxu0 %v1298_v0  ;;  %1159 = vmatprep.mubr.msk.f32.mxu1 %vm1299_vm0, %v1298_v0 }
  0x2f   :  { %1155 = vmatmul.mubr.f32.vlgmr.msra.gmra.mxu0 %v122_v14  ;;  %1167 = vmatprep.subr.mxu1 %v1298_v0 }
  0x30   :  { %1163 = vmatpush3.xpose.msra.mxu0 %v164_v13  ;;  %1160 = vmatmul.mubr.f32.vlgmr.msra.gmra.mxu1 %v123_v17 }
  0x31   :  { %1168 = vmatpush3.xpose.msra.mxu1 %v86_v7  ;;  %1164 = vmatprep.mubr.msk.f32.mxu0 %vm1299_vm0, %v1298_v0 }
  0x32   :  { %1172 = vmatprep.subr.mxu0 %v1298_v0  ;;  %1169 = vmatprep.mubr.msk.f32.mxu1 %vm1299_vm0, %v1298_v0 }
  0x33   :  { %1165 = vmatmul.mubr.f32.vlgmr.msra.gmra.mxu0 %v121_v11  ;;  %1177 = vmatprep.subr.mxu1 %v1298_v0 }
  0x34   :  { %1173 = vmatpush3.xpose.msra.mxu0 %v538_v12  ;;  %1170 = vmatmul.mubr.f32.vlgmr.msra.gmra.mxu1 %v121_v11 }
  0x35   :  { %1178 = vmatpush3.xpose.msra.mxu1 %v618_v27  ;;  %1174 = vmatprep.mubr.msk.f32.mxu0 %vm1299_vm0, %v1298_v0 }
  0x36   :  { %1182 = vmatprep.subr.mxu0 %v1298_v0  ;;  %1179 = vmatprep.mubr.msk.f32.mxu1 %vm1299_vm0, %v1298_v0 }
  0x37   :  { %1175 = vmatmul.mubr.f32.vlgmr.msra.gmra.mxu0 %v577_v28  ;;  %1187 = vmatprep.subr.mxu1 %v1298_v0 }
  0x38   :  { %1183 = vmatpush3.xpose.msra.mxu0 %v615_v18  ;;  %1180 = vmatmul.mubr.f32.vlgmr.msra.gmra.mxu1 %v573_v15  ;;  %v1300_v18 = vmov 1983009808  }
  0x39   :  { %1188 = vmatpush3.xpose.msra.mxu1 %v538_v12  ;;  %1184 = vmatprep.mubr.msk.f32.mxu0 %vm1299_vm0, %v1298_v0  ;;  %v994_v19 = vunpack.c.l.s4 %v1300_v18 }
  0x3a   :  { %1192 = vmatprep.subr.mxu0 %v1298_v0  ;;  %1189 = vmatprep.mubr.msk.f32.mxu1 %vm1299_vm0, %v1298_v0 }
  0x3b   :  { %1185 = vmatmul.mubr.f32.vlgmr.msra.gmra.mxu0 %v574_v21  ;;  %1197 = vmatprep.subr.mxu1 %v1298_v0  ;;  %v995_v22 = vunpack.c.0.s8 %v994_v19 }
  0x3c   :  { %1193 = vmatpush3.xpose.msra.mxu0 %v616_v23  ;;  %1190 = vmatmul.mubr.f32.vlgmr.msra.gmra.mxu1 %v575_v24  ;;  %v997_v23 = vshrl.u32 %v996_v20, 7  ;;  %v1301_v24 = vmov 1934713408  }
  0x3d   :  { %1198 = vmatpush3.xpose.msra.mxu1 %v538_v12  ;;  %1194 = vmatprep.mubr.msk.f32.mxu0 %vm1299_vm0, %v1298_v0  ;;  %v1025_v25 = vunpack.c.l.s4 %v1301_v24 }
  0x3e   :  { %1199 = vmatprep.mubr.msk.f32.mxu1 %vm1299_vm0, %v1298_v0  ;;  %v998_v27 = vsub.s32 %v995_v22, %v997_v23 }
  0x3f   :  { %1195 = vmatmul.mubr.f32.vlgmr.msra.gmra.mxu0 %v573_v15  ;;  %v1026_v28 = vunpack.c.0.s8 %v1025_v25 }
  0x40   :  { %1200 = vmatmul.mubr.f32.vlgmr.msra.gmra.mxu1 %v573_v15 }
  0xeb   :  { %v127_v29 = vpop.f32.mrf.mxu0 }
  0xec   :  { %v203_v30 = vpop.f32.mrf.mxu1 }
  0xed   :  { %v204_v31 = vadd.f32 %v203_v30, %v127_v29  ;;  %v1146_v32 = vpop.f32.mrf.mxu0 }
  0xee   :  { %v1151_v33 = vpop.f32.mrf.mxu1 }
  0xef   :  { %v277_v34 = vpop.f32.mrf.mxu0 }
  0xf0   :  { %v278_v35 = vadd.f32 %v277_v34, %v204_v31  ;;  %v351_v36 = vpop.f32.mrf.mxu1  ;;  %v1029_v34 = vsub.s32 %v1026_v28, %v997_v23 }
  0xf1   :  { %v1156_v37 = vpop.f32.mrf.mxu0 }
  0xf2   :  { %v352_v38 = vadd.f32 %v351_v36, %v278_v35  ;;  %v1161_v39 = vpop.f32.mrf.mxu1 }
  0xf3   :  { %v425_v40 = vpop.f32.mrf.mxu0 }
  0xf4   :  { %v426_v41 = vadd.f32 %v425_v40, %v352_v38  ;;  %v497_v42 = vpop.f32.mrf.mxu1 }
  0xf5   :  { %v1166_v43 = vpop.f32.mrf.mxu0 }
  0xf6   :  { %v498_v45 = vadd.f32 %v497_v42, %v426_v41  ;;  %v1171_v46 = vpop.f32.mrf.mxu1 }
  0xf7   :  { %v579_v47 = vpop.f32.mrf.mxu0 }
  0xf8   :  { %v655_v48 = vpop.f32.mrf.mxu1  ;;  %v967_v49 = vsub.f32 %v498_v45, %v1116_v44 }
  0xf9   :  { %v656_v50 = vadd.f32 %v655_v48, %v579_v47  ;;  %v1176_v51 = vpop.f32.mrf.mxu0 }
  0xfa   :  { %v1181_v52 = vpop.f32.mrf.mxu1  ;;  %v970_v53 = vsel %vm969_vm2, %v967_v49, -inf }
  0xfb   :  { %971 = vmax.xlane.f32.xlu0 %v970_v53  ;;  %v729_v54 = vpop.f32.mrf.mxu0 }
  0xfc   :  { %v730_v55 = vadd.f32 %v729_v54, %v656_v50  ;;  %v803_v56 = vpop.f32.mrf.mxu1 }
  0xfd   :  { %v1186_v57 = vpop.f32.mrf.mxu0 }
  0xfe   :  { %v804_v58 = vadd.f32 %v803_v56, %v730_v55  ;;  %v1191_v59 = vpop.f32.mrf.mxu1 }
  0xff   :  { %v877_v60 = vpop.f32.mrf.mxu0 }
 0x100   :  { %v878_v61 = vadd.f32 %v877_v60, %v804_v58  ;;  %v949_v62 = vpop.f32.mrf.mxu1 }
 0x101   :  { %v1196_v63 = vpop.f32.mrf.mxu0 }
 0x102   :  { %v950_v2 = vadd.f32 %v949_v62, %v878_v61  ;;  %v1201_v3 = vpop.f32.mrf.mxu1 }
 0x104   :  { %v968_v4 = vsub.f32 %v950_v2, %v1117_v1 }
 0x106   :  { %v973_v5 = vsel %vm969_vm2, %v968_v4, -inf }
 0x107   :  { %974 = vmax.xlane.f32.xlu0 %v973_v5 }
 0x184   :  { %v972_v6 = vpop.xlane.xlu0 %971 }
 0x185   :  { %v976_v7 = vsub.f32 %v967_v49, %v972_v6 }
 0x187   :  { %v978_v8 = vmul.f32 1.442695, %v976_v7 }
 0x189   :  { %1218 = vpow2.f32 %v978_v8 }
 0x190   :  { %v975_v9 = vpop.xlane.xlu0 %974 }
 0x191   :  { %v977_v10 = vsub.f32 %v968_v4, %v975_v9 }
 0x193   :  { %v980_v11 = vmul.f32 1.442695, %v977_v10 }
 0x195   :  { %1220 = vpow2.f32 %v980_v11 }
 0x196   :  { %v1219_v12 = vpop.eup %1218 }
 0x197   :  { %v982_v13 = vsel %vm969_vm2, %v1219_v12, 0.0 }
 0x198   :  { %983 = vadd.xlane.f32.xlu1 %v982_v13 }
 0x1a2   :  { %v1221_v14 = vpop.eup %1220 }
 0x1a3   :  { %v985_v15 = vsel %vm969_vm2, %v1221_v14, 0.0 }
 0x1a4   :  { %986 = vadd.xlane.f32.xlu1 %v985_v15 }
 0x221   :  { %v984_v16 = vpop.xlane.xlu1 %983 }
 0x222   :  { %1222 = vrcp.f32 %v984_v16 }
 0x22d   :  { %v987_v17 = vpop.xlane.xlu1 %986 }
 0x22e   :  { %1224 = vrcp.f32 %v987_v17 }
 0x22f   :  { %v1223_v21 = vpop.eup %1222 }
 0x230   :  { %v990_v26 = vmul.f32 %v1223_v21, %v1219_v12 }
 0x232   :  { %v992_v31 = vcombine.high %v990_v26, %v1298_v0  ;;  %v999_v32 = vrot.slane %v990_v26, %v998_v27 }
 0x234   :  { %v1006_v38 = vrot.slane %v992_v31, %v998_v27 }
 0x23b   :  { %v1225_v29 = vpop.eup %1224 }
 0x23c   :  { %v991_v30 = vmul.f32 %v1225_v29, %v1221_v14 }
 0x23e   :  { %v1014_v33 = vrot.slane %v991_v30, %v998_v27  ;;  %v1007_v35 = vcombine.high %v991_v30, %v1298_v0 }
 0x240   :  { %v1023_v36 = vcombine.high %v999_v32, %v1014_v33  ;;  %v1022_v37 = vcombine.low %v999_v32, %v1014_v33  ;;  %v1021_v39 = vrot.slane %v1007_v35, %v998_v27 }
 0x242   :  { %v1037_v40 = vrot.slane %v1023_v36, %v1029_v34  ;;  %v1030_v41 = vrot.slane %v1022_v37, %v1029_v34  ;;  %v1038_v42 = vcombine.low %v1006_v38, %v1021_v39  ;;  %v1039_v45 = vcombine.high %v1006_v38, %v1021_v39 }
 0x244   :  { %1063 = vrot.lane.b32.xlu1 %v1037_v40, %s1296_s19  ;;  %v1054_v43 = vcombine.high %v1030_v41, %v1298_v0  ;;  %v1046_v44 = vrot.slane %v1038_v42, %v1029_v34  ;;  %v1055_v46 = vcombine.high %v1037_v40, %v1298_v0  ;;  %v1053_v48 = vrot.slane %v1039_v45, %v1029_v34 }
 0x246   :  { %1059 = vrot.lane.b32.xlu0 %v1054_v43, %s1294_s13  ;;  %v1056_v47 = vcombine.high %v1046_v44, %v1298_v0  ;;  %v1057_v49 = vcombine.high %v1053_v48, %v1298_v0 }
 0x248   :  { %1067 = vrot.lane.b32.xlu1 %v1055_v46, %s1302_s0 }
 0x24a   :  { %1075 = vrot.lane.b32.xlu0 %v1056_v47, %s1303_s1 }
 0x24c   :  { %1071 = vrot.lane.b32.xlu1 %v1046_v44, %s1304_s23 }
 0x24e   :  { %1083 = vrot.lane.b32.xlu0 %v1057_v49, %s1305_s24 }
 0x250   :  { %1079 = vrot.lane.b32.xlu1 %v1053_v48, %s1306_s25 }
 0x2b6   :  { %v1064_v50 = vpop.permute.xlu1 %1063 }
 0x2b8   :  { %v1060_v51 = vpop.permute.xlu0 %1059 }
 0x2b9   :  { %v1086_v52 = vsel %vm969_vm2, %v1030_v41, %v1060_v51 }
 0x2ba   :  { %v1068_v53 = vpop.permute.xlu1 %1067  ;;  %v1088_v54 = vsel %vm1087_vm3, %v1086_v52, %v1064_v50 }
 0x2bb   :  { %v1090_v56 = vsel %vm1089_vm4, %v1088_v54, %v1068_v53 }
 0x2bc   :  { %v1076_v55 = vpop.permute.xlu0 %1075 }
 0x2be   :  { %v1072_v57 = vpop.permute.xlu1 %1071 }
 0x2bf   :  { %v1091_v58 = vsel %vm48_vm1, %v1090_v56, %v1072_v57 }
 0x2c0   :  { %v1093_v59 = vsel %vm1092_vm5, %v1091_v58, %v1076_v55  ;;  %v1084_v60 = vpop.permute.xlu0 %1083 }
 0x2c2   :  { %v1080_v0 = vpop.permute.xlu1 %1079 }
 0x2c3   :  { %v1095_v61 = vsel %vm1094_vm6, %v1093_v59, %v1080_v0 }
 0x2c4   :  { %v1097_v62 = vsel %vm1096_vm7, %v1095_v61, %v1084_v60 }
 0x2c5   :  { %1099 = vst.msk [vmem:[#allocation7] sm:$0x3] %vm1098_vm8, %v1097_v62 }
 0x2c6   :  { %1277 = shalt.err (!%p1274_p0)
}
 0x2c7   :  { %1109 = dma.vmem_to_hbm [thread:$0]  %s1107_s27, 32, %s1391_s2, [#allocation4]  }
 0x2c8   :  { %1290 = dma.done.wait [#allocation4], 32  }
 0x2c9   :  { %1291 = vsyncadd [#allocation4], 4294967264 }
 0x2ca   :  { %1113 = vsyncpa [#allocation3], 1 }
 0x2cb   :  { %1114 = vsyncpa [#allocation6], 1 }
 0x2cc   :  { %1115 = vsyncpa [#allocation4], 1 }

</bundles_post_ra>
